<compile_context>
chip_gen: v5e
topology: v5e:2x2
jax: 0.10.0
libtpu: 0.0.40
codegen_flags: <defaults>
</compile_context>

<pallas_src>
import functools

import jax
import jax.numpy as jnp
from jax.experimental import pallas as pl
from jax.experimental.pallas import tpu as pltpu


# ---------------- Pallas kernels (one fused kernel per branch) ----------------
def _elbo_mse_kernel(yhat_ref, y_ref, kls_ref, beta_ref, loss_ref, *, inv_n):
    # yhat_ref, y_ref: (B, H*W) in VMEM; kls_ref: (1, K) in VMEM; beta_ref: (1,) in SMEM.
    d = yhat_ref[...] - y_ref[...]
    rec = jnp.sum(d * d, keepdims=True) * inv_n            # (1, 1)  == sum(dim=(1,2)).mean()
    kl = jnp.sum(kls_ref[...], keepdims=True)              # (1, 1)  == torch.sum(kls)
    loss_ref[...] = rec + beta_ref[0] * kl                  # (1, 1) store


def _elbo_logstd_kernel(yhat_ref, y_ref, logstd2_ref, kls_ref, beta_ref, loss_ref, *, inv_n):
    d = yhat_ref[...] - y_ref[...]
    ls = logstd2_ref[...]
    rec_term1 = jnp.sum((d * d) / jnp.exp(ls), keepdims=True) * inv_n
    rec_term2 = jnp.sum(ls, keepdims=True) * inv_n
    kl = jnp.sum(kls_ref[...], keepdims=True)
    loss_ref[...] = rec_term1 + rec_term2 + beta_ref[0] * kl


# ---------------- wrapper ----------------
def elbo_loss(yhat, y, kls, logstd2=None, beta=1.0):
    """Pallas implementation of ELBOLoss.forward (k=None path)."""
    assert yhat.shape == y.shape and yhat.ndim >= 3, yhat.shape
    shape = yhat.shape

    # torch: mse.sum(dim=(1,2)).mean()  ==  total_sum / prod(dims other than 1 and 2)
    outer = 1
    for i, dim in enumerate(shape):
        if i not in (1, 2):
            outer *= dim
    inv_n = 1.0 / float(outer)

    # Lane-dense 2-D slabs: (B, H*W).  For the demo this is (2, 256) -> full 128-lane vregs.
    yhat2 = yhat.reshape(shape[0], -1).astype(jnp.float32)
    y2 = y.reshape(shape[0], -1).astype(jnp.float32)
    kls2 = jnp.asarray(kls, jnp.float32).reshape(1, -1)
    beta_arr = jnp.asarray([beta], jnp.float32)

    vmem = pl.BlockSpec(memory_space=pltpu.MemorySpace.VMEM)
    smem = pl.BlockSpec(memory_space=pltpu.MemorySpace.SMEM)

    if logstd2 is None:
        kernel = functools.partial(_elbo_mse_kernel, inv_n=inv_n)
        operands = (yhat2, y2, kls2, beta_arr)
        in_specs = [vmem, vmem, vmem, smem]
    else:
        assert logstd2.shape == shape, logstd2.shape
        ls2 = logstd2.reshape(shape[0], -1).astype(jnp.float32)
        kernel = functools.partial(_elbo_logstd_kernel, inv_n=inv_n)
        operands = (yhat2, y2, ls2, kls2, beta_arr)
        in_specs = [vmem, vmem, vmem, vmem, smem]

    out = pl.pallas_call(
        kernel,
        out_shape=jax.ShapeDtypeStruct((1, 1), jnp.float32),
        in_specs=in_specs,
        out_specs=vmem,
    )(*operands)
    return out[0, 0]


# ---------------- pure-JAX reference (for correctness check only) ----------------
def elbo_reference(yhat, y, kls, logstd2=None, beta=1.0):
    mse = (yhat - y) ** 2
    if logstd2 is None:
        rec = mse.sum(axis=(1, 2)).mean()
    else:
        rec = (mse / jnp.exp(logstd2)).sum(axis=(1, 2)).mean() + logstd2.sum(axis=(1, 2)).mean()
    return rec + beta * jnp.sum(kls)


if __name__ == "__main__":
    key = jax.random.PRNGKey(0)
    k1, k2, k3, k4 = jax.random.split(key, 4)

    # Small shapes consistent with the H-prob-UNet outputs feeding this loss:
    # predictions / targets (B, H, W) = (2, 16, 16); per-scale KL values (4,).
    B, H, W = 2, 16, 16
    yhat = jax.random.normal(k1, (B, H, W), jnp.float32)
    y = jax.random.normal(k2, (B, H, W), jnp.float32)
    kls = jax.random.uniform(k3, (4,), jnp.float32)
    logstd2 = 0.1 * jax.random.normal(k4, (B, H, W), jnp.float32)

    # Default path (logstd2=None) and heteroscedastic path (logstd2 given).
    loss = jax.block_until_ready(elbo_loss(yhat, y, kls, beta=1.0))
    loss_ls = jax.block_until_ready(elbo_loss(yhat, y, kls, logstd2=logstd2, beta=1.0))

    ref = elbo_reference(yhat, y, kls, beta=1.0)
    ref_ls = elbo_reference(yhat, y, kls, logstd2=logstd2, beta=1.0)

    assert loss.shape == () and loss.dtype == jnp.float32
    assert bool(jnp.isfinite(loss)) and bool(jnp.isfinite(loss_ls))
    assert bool(jnp.allclose(loss, ref, rtol=1e-5, atol=1e-5)), (loss, ref)
    assert bool(jnp.allclose(loss_ls, ref_ls, rtol=1e-5, atol=1e-5)), (loss_ls, ref_ls)

    print("KERNEL_OK")
</pallas_src>

<mosaic_0001>
module attributes {stable_mosaic.version = 11 : i64} {
  func.func @_elbo_mse_kernel(%arg0: memref<2x256xf32, #tpu.memory_space<vmem>>, %arg1: memref<2x256xf32, #tpu.memory_space<vmem>>, %arg2: memref<1x4xf32, #tpu.memory_space<vmem>>, %arg3: memref<1xf32, #tpu.memory_space<smem>>, %arg4: memref<1x1xf32, #tpu.memory_space<vmem>>) attributes {dimension_semantics = [], scalar_prefetch = 0 : i64, scratch_operands = 0 : i64, tpu.core_type = #tpu.core_type<tc>} {
    %c0 = arith.constant 0 : index
    %c0_0 = arith.constant 0 : index
    %0 = vector.load %arg0[%c0, %c0_0] : memref<2x256xf32, #tpu.memory_space<vmem>>, vector<2x256xf32>
    %c0_1 = arith.constant 0 : index
    %c0_2 = arith.constant 0 : index
    %1 = vector.load %arg1[%c0_1, %c0_2] : memref<2x256xf32, #tpu.memory_space<vmem>>, vector<2x256xf32>
    %2 = arith.subf %0, %1 : vector<2x256xf32>
    %3 = arith.mulf %2, %2 : vector<2x256xf32>
    %4 = vector.shape_cast %3 : vector<2x256xf32> to vector<1x2x256xf32>
    %cst = arith.constant dense<0.000000e+00> : vector<1xf32>
    %5 = vector.multi_reduction <add>, %4, %cst [1, 2] : vector<1x2x256xf32> to vector<1xf32>
    %6 = vector.shape_cast %5 : vector<1xf32> to vector<1x1x1xf32>
    %7 = vector.extract %6[0, 0, 0] : f32 from vector<1x1x1xf32>
    %8 = vector.broadcast %7 : f32 to vector<1x1xf32>
    %cst_3 = arith.constant 5.000000e-01 : f32
    %9 = vector.broadcast %cst_3 : f32 to vector<1x1xf32>
    %10 = arith.mulf %8, %9 : vector<1x1xf32>
    %c0_4 = arith.constant 0 : index
    %c0_5 = arith.constant 0 : index
    %11 = vector.load %arg2[%c0_4, %c0_5] : memref<1x4xf32, #tpu.memory_space<vmem>>, vector<1x4xf32>
    %12 = vector.shape_cast %11 : vector<1x4xf32> to vector<1x1x4xf32>
    %cst_6 = arith.constant dense<0.000000e+00> : vector<1xf32>
    %13 = vector.multi_reduction <add>, %12, %cst_6 [1, 2] : vector<1x1x4xf32> to vector<1xf32>
    %14 = vector.shape_cast %13 : vector<1xf32> to vector<1x1x1xf32>
    %15 = vector.extract %14[0, 0, 0] : f32 from vector<1x1x1xf32>
    %16 = vector.broadcast %15 : f32 to vector<1x1xf32>
    %c0_7 = arith.constant 0 : index
    %17 = memref.load %arg3[%c0_7] : memref<1xf32, #tpu.memory_space<smem>>
    %18 = vector.broadcast %17 : f32 to vector<1x1xf32>
    %19 = arith.mulf %18, %16 : vector<1x1xf32>
    %20 = arith.addf %10, %19 : vector<1x1xf32>
    %c0_8 = arith.constant 0 : index
    %c0_9 = arith.constant 0 : index
    %21 = vector.load %arg4[%c0_8, %c0_9] : memref<1x1xf32, #tpu.memory_space<vmem>>, vector<1x1xf32>
    tpu.vector_store %arg4[%c0_8, %c0_9], %20 {strides = array<i32>} : memref<1x1xf32, #tpu.memory_space<vmem>>, vector<1x1xf32>,
    return
  }
}

</mosaic_0001>

<bundles_post_ra>
// kernel: tpu_custom_call.1
= control target key start
LH: loop header
LB: loop body
LE: loop exit
PB: predicated region body
PF: predicated region fallthrough
CT: control target
= control target key end

     0   :  { %10 = vsyncpa [#allocation4], 0  ;;  %s237_s0 = inlined_call_operand.hbm [shape: f32[2,256], index: 0, kind: input, shape index: {}]   ;;  %s238_s1 = inlined_call_operand.hbm [shape: f32[2,256], index: 1, kind: input, shape index: {}]   ;;  %s239_s2 = inlined_call_operand.vmem [shape: f32[1,4], index: 2, kind: input, shape index: {}]   ;;  %s240_s3 = inlined_call_operand.<no memory space> [shape: f32[1], index: 3, kind: input, shape index: {}]   ;;  %s241_s4 = inlined_call_operand.hbm [shape: f32[1,1], index: 4, kind: output, shape index: {}]  }
   0x1   :  { %11 = vsyncpa [#allocation7], 0 }
   0x2   :  { %12 = vsyncpa [#allocation5], 0  ;;  %s18_s17 = sshll.u32 %s237_s0, 4  ;;  %s194_s18 = smov [#allocation3]   ;;  %s19_s17 = int_to_ptr.hbm [resolvable:$true] %s18_s17 }
   0x3   :  { %s20_s19 = sshll.u32 %s194_s18, 4  ;;  %s29_s22 = sshll.u32 %s238_s1, 4  ;;  %s21_s19 = int_to_ptr.vmem [resolvable:$true] %s20_s19  ;;  %s30_s22 = int_to_ptr.hbm [resolvable:$true] %s29_s22 }
   0x4   :  { %23 = dma.hbm_to_vmem [thread:$0]  %s19_s17, 64, %s21_s19, [#allocation4]  }
   0x5   :  { %s195_s23 = smov [#allocation6]  }
   0x6   :  { %s31_s24 = sshll.u32 %s195_s23, 4  ;;  %s32_s24 = int_to_ptr.vmem [resolvable:$true] %s31_s24 }
   0x7   :  { %34 = dma.hbm_to_vmem [thread:$0]  %s30_s22, 64, %s32_s24, [#allocation7]  }
   0x8   :  { %188 = dma.done.wait [#allocation4], 64  }
   0x9   :  { %189 = vsyncadd [#allocation4], 4294967232 }
   0xa   :  { %190 = dma.done.wait [#allocation7], 64  }
   0xb   :  { %191 = vsyncadd [#allocation7], 4294967232  ;;  %v47_v0 = vld [vmem:[#allocation3] sm:$0xf]  ;;  %v48_v1 = vld [vmem:[#allocation6] sm:$0xf]  ;;  %v86_v26 = vstv %s240_s3 }
   0xc   :  { %v49_v2 = vsub.f32 %v47_v0, %v48_v1  ;;  %vm57_vm0 = vcmask 1041408   ;;  %v72_v9 = vld [vmem:[%s239_s2] sm:$0x1]  ;;  %vm73_vm1 = vcmask 24576   ;;  %s196_s28 = smov [#allocation8]   ;;  %s98_s6 = sshll.u32 %s241_s4, 4  ;;  %s99_s6 = int_to_ptr.hbm [resolvable:$true] %s98_s6 }
   0xd   :  { %v74_v10 = vsel %vm73_vm1, %v72_v9, 0.0  ;;  %s96_s29 = sshll.u32 %s196_s28, 4  ;;  %vm89_vm2 = vcmask 0   ;;  %s97_s29 = int_to_ptr.vmem [resolvable:$true] %s96_s29 }
   0xe   :  { %v50_v3 = vmul.f32 %v49_v2, %v49_v2 }
  0x10   :  { %52 = vst [vmem:[#allocation1] ss:$4 sm:$0xff] %v50_v3 }
  0x17   :  { %v53_v4 = vld.sshfl [vmem:[#allocation1] sm:$0xff pattern:$0x73625140]  ;;  %v54_v5 = vld.sshfl [vmem:[#allocation1 + $0x8] sm:$0xff pattern:$0x73625140] }
  0x18   :  { %v58_v6 = vsel %vm57_vm0, %v53_v4, 0.0  ;;  %v59_v7 = vsel %vm57_vm0, %v54_v5, 0.0 }
  0x19   :  { %v60_v8 = vadd.f32 %v59_v7, %v58_v6 }
  0x1b   :  { %61 = vadd.xlane.f32.xlu0 %v60_v8 }
  0x23   :  { %75 = vadd.xlane.f32.xlu0 %v74_v10 }
  0x8e   :  { %v62_v11 = vpop.xlane.xlu0 %61 }
  0x8f   :  { %v63_v12 = vrot.slane %v62_v11, 4 }
  0x91   :  { %v64_v13 = vadd.f32 %v63_v12, %v62_v11 }
  0x93   :  { %v65_v14 = vrot.slane %v64_v13, 2 }
  0x95   :  { %v66_v15 = vadd.f32 %v65_v14, %v64_v13 }
  0x96   :  { %v76_v16 = vpop.xlane.xlu0 %75 }
  0x97   :  { %v77_v17 = vrot.slane %v76_v16, 4  ;;  %v67_v18 = vrot.slane %v66_v15, 1 }
  0x99   :  { %v78_v19 = vadd.f32 %v77_v17, %v76_v16  ;;  %v68_v20 = vadd.f32 %v67_v18, %v66_v15 }
  0x9b   :  { %v79_v21 = vrot.slane %v78_v19, 2  ;;  %109 = vpush %v68_v20 }
  0x9d   :  { %v80_v22 = vadd.f32 %v79_v21, %v78_v19 }
  0x9f   :  { %v81_v23 = vrot.slane %v80_v22, 1 }
  0xa1   :  { %v82_v24 = vadd.f32 %v81_v23, %v80_v22 }
  0xa3   :  { %111 = vpush %v82_v24 }
  0xcc   :  { %s110_s2 = spop %109 }
  0xcd   :  { %v70_v25 = vstv %s110_s2 }
  0xce   :  { %v71_v28 = vmul.f32 0.5, %v70_v25 }
  0xd4   :  { %s112_s27 = spop %111 }
  0xd5   :  { %v84_v27 = vstv %s112_s27 }
  0xd6   :  { %v87_v29 = vmul.f32 %v86_v26, %v84_v27 }
  0xd8   :  { %v88_v30 = vadd.f32 %v87_v29, %v71_v28 }
  0xda   :  { %90 = vst.msk [vmem:[#allocation8] sm:$0x1] %vm89_vm2, %v88_v30 }
  0xdb   :  { %101 = dma.vmem_to_hbm [thread:$0]  %s97_s29, 16, %s99_s6, [#allocation5]  }
  0xdc   :  { %192 = dma.done.wait [#allocation5], 16  }
  0xdd   :  { %193 = vsyncadd [#allocation5], 4294967280 }
  0xde   :  { %106 = vsyncpa [#allocation4], 1 }
  0xdf   :  { %107 = vsyncpa [#allocation7], 1 }
  0xe0   :  { %108 = vsyncpa [#allocation5], 1 }

</bundles_post_ra>
